<compile_context>
chip_gen: v5e
topology: v5e:2x2
jax: 0.10.0
libtpu: 0.0.40
codegen_flags: <defaults>
</compile_context>

<pallas_src>
import math
import functools

import jax
import jax.numpy as jnp
from jax import lax
from jax.experimental import pallas as pl
from jax.experimental.pallas import tpu as pltpu


# ---------------------------------------------------------------------------
# Portable in-kernel uniform hash (plain int32 VPU ops; no pltpu.prng_*).
# ---------------------------------------------------------------------------
_MIX1 = -2048144789   # 0x85EBCA6B as int32 (murmur3 finalizer)
_MIX2 = -1028477387   # 0xC2B2AE35 as int32
_GOLD = -1640531535   # 0x9E3779B1 as int32 (golden-ratio seed mix)


def _mix32(h):
    """murmur3 finalizer: avalanches a 32-bit integer (wrapping int32 math)."""
    h = h ^ lax.shift_right_logical(h, jnp.int32(16))
    h = h * jnp.int32(_MIX1)
    h = h ^ lax.shift_right_logical(h, jnp.int32(13))
    h = h * jnp.int32(_MIX2)
    h = h ^ lax.shift_right_logical(h, jnp.int32(16))
    return h


def _keep_mask(shape, seed_scalar, drop_threshold):
    """Boolean keep-mask with P(keep)=1-p, deterministic in (seed, element)."""
    strides = pl.strides_from_shape(shape)
    idx = lax.broadcasted_iota(jnp.int32, shape, 0) * jnp.int32(strides[0])
    for axis in range(1, len(shape)):
        idx = idx + lax.broadcasted_iota(jnp.int32, shape, axis) * jnp.int32(strides[axis])
    tile_elems = 1
    for s in shape:
        tile_elems *= s
    # Unique counter per element across the whole grid, hashed with the seed
    # (order-independent -> safe with dimension_semantics=("parallel",)).
    h = idx + pl.program_id(0) * jnp.int32(tile_elems)
    h = _mix32(h ^ (seed_scalar * jnp.int32(_GOLD)))
    r = h & jnp.int32(0x7FFFFFFF)            # uniform over [0, 2^31)
    return r >= jnp.int32(drop_threshold)    # keep prob = 1 - p


# ---------------------------------------------------------------------------
# Kernels
# ---------------------------------------------------------------------------
def _add_kernel_2d(x_ref, pe_ref, o_ref):
    # x_ref/pe_ref/o_ref: (ts, B*D) — lane- and sublane-dense elementwise add.
    o_ref[...] = x_ref[...] + pe_ref[...]


def _add_kernel_3d(x_ref, pe_ref, o_ref):
    # x_ref/o_ref: (ts, B, D); pe_ref: (ts, D) broadcast over batch (sublanes).
    o_ref[...] = x_ref[...] + pe_ref[...][:, None, :]


def _add_dropout_kernel_2d(seed_ref, x_ref, pe_ref, o_ref, *, drop_threshold, scale):
    y = x_ref[...] + pe_ref[...]
    keep = _keep_mask(y.shape, seed_ref[0], drop_threshold)
    o_ref[...] = jnp.where(keep, y * jnp.asarray(scale, dtype=y.dtype),
                           jnp.asarray(0, dtype=y.dtype))


def _add_dropout_kernel_3d(seed_ref, x_ref, pe_ref, o_ref, *, drop_threshold, scale):
    y = x_ref[...] + pe_ref[...][:, None, :]
    keep = _keep_mask(y.shape, seed_ref[0], drop_threshold)
    o_ref[...] = jnp.where(keep, y * jnp.asarray(scale, dtype=y.dtype),
                           jnp.asarray(0, dtype=y.dtype))


# ---------------------------------------------------------------------------
# Module
# ---------------------------------------------------------------------------
class PositionalEncodingPallas:
    """JAX/Pallas port of the PyTorch PositionalEncoding module."""

    EVAL_TILE_BYTES = 6 * 1024 * 1024    # ~6 MiB x per tile (review: 4-8 MiB)
    TRAIN_TILE_BYTES = 3 * 1024 * 1024   # smaller: dropout int32 temporaries
    VMEM_LIMIT_BYTES = 48 * 1024 * 1024  # fits v7x (64 MiB phys), v5e/v6e (128)

    def __init__(self, d_model: int, dropout: float = 0.1, max_len: int = 5000,
                 dtype=jnp.float32):
        assert d_model % 2 == 0, "d_model must be even (sin/cos interleave)"
        assert 0.0 <= dropout <= 1.0, "dropout prob must be in [0, 1]"
        self.p = float(dropout)
        # Same math as the PyTorch module (size-1 batch axis of the buffer dropped).
        position = jnp.arange(max_len, dtype=jnp.float32)[:, None]            # [L,1]
        div_term = jnp.exp(jnp.arange(0, d_model, 2, dtype=jnp.float32)
                           * (-math.log(10000.0) / d_model))                  # [D/2]
        pe = jnp.zeros((max_len, d_model), dtype=jnp.float32)
        pe = pe.at[:, 0::2].set(jnp.sin(position * div_term))
        pe = pe.at[:, 1::2].set(jnp.cos(position * div_term))
        self.pe = pe.astype(dtype)                                             # [L,D]

    @staticmethod
    def _seq_tile(seq_len: int, row_bytes: int, sub: int, target_bytes: int) -> int:
        """Rows per tile: ~target bytes of x, rounded to the sublane multiple."""
        rows = max(1, target_bytes // max(1, row_bytes))
        if rows >= seq_len:
            return seq_len                      # single full block along seq
        return max(sub, (rows // sub) * sub)

    def __call__(self, x, *, training: bool = False, seed: int = 0):
        """x: [seq_len, batch, d_model] -> [seq_len, batch, d_model]"""
        S, B, D = x.shape
        pe = self.pe[:S]
        if pe.dtype != x.dtype:
            pe = pe.astype(x.dtype)             # cast once in the wrapper

        itemsize = x.dtype.itemsize
        sub = 8 * max(1, 4 // itemsize)         # 8 f32 / 16 bf16 / 32 int8-fp8
        target = self.TRAIN_TILE_BYTES if (training and self.p > 0.0) \
            else self.EVAL_TILE_BYTES
        ts = self._seq_tile(S, B * D * itemsize, sub, target)
        grid = (pl.cdiv(S, ts),)

        # Layout choice (review #4/#5): small / non-sublane-aligned batch ->
        # flatten (B, D) into the lane axis; pe is tiled over batch once in the
        # wrapper (cheap XLA op, hoisted under jit).  Sublane-aligned batch ->
        # keep 3-D blocks and broadcast pe in-kernel (no widened-pe traffic).
        flat_batch = (B % sub) != 0
        idx2 = lambda i, *_: (i, 0)             # *_ absorbs prefetch refs
        idx3 = lambda i, *_: (i, 0, 0)
        if flat_batch:
            x_in = x.reshape(S, B * D)          # contiguous view, free
            pe_in = jnp.tile(pe, (1, B))        # [S, B*D]
            x_spec = pl.BlockSpec((ts, B * D), idx2)
            pe_spec = pl.BlockSpec((ts, B * D), idx2)
            out_spec = pl.BlockSpec((ts, B * D), idx2)
            out_shape = jax.ShapeDtypeStruct((S, B * D), x.dtype)
            eval_kernel, drop_kernel = _add_kernel_2d, _add_dropout_kernel_2d
            pe_bytes = S * B * D * itemsize
        else:
            x_in, pe_in = x, pe
            x_spec = pl.BlockSpec((ts, B, D), idx3)
            pe_spec = pl.BlockSpec((ts, D), idx2)
            out_spec = pl.BlockSpec((ts, B, D), idx3)
            out_shape = jax.ShapeDtypeStruct((S, B, D), x.dtype)
            eval_kernel, drop_kernel = _add_kernel_3d, _add_dropout_kernel_3d
            pe_bytes = S * D * itemsize

        params = pltpu.CompilerParams(
            dimension_semantics=("parallel",),
            vmem_limit_bytes=self.VMEM_LIMIT_BYTES,
        )
        n_bytes = S * B * D * itemsize
        cost = pl.CostEstimate(flops=S * B * D, transcendentals=0,
                               bytes_accessed=2 * n_bytes + pe_bytes)

        if (not training) or self.p == 0.0:
            out = pl.pallas_call(
                eval_kernel,
                out_shape=out_shape,
                grid=grid,
                in_specs=[x_spec, pe_spec],
                out_specs=out_spec,
                compiler_params=params,
                cost_estimate=cost,
            )(x_in, pe_in)
            return out.reshape(S, B, D) if flat_batch else out

        if self.p >= 1.0:
            return jnp.zeros_like(x)            # degenerate p=1.0 (torch drops all)

        drop_threshold = min(int(self.p * (1 << 31)), (1 << 31) - 1)
        scale = 1.0 / (1.0 - self.p)
        kern = functools.partial(drop_kernel,
                                 drop_threshold=drop_threshold, scale=scale)
        grid_spec = pltpu.PrefetchScalarGridSpec(
            num_scalar_prefetch=1,              # seed lands in SMEM before grid
            grid=grid,
            in_specs=[x_spec, pe_spec],
            out_specs=out_spec,
        )
        seed_arr = jnp.asarray([seed], dtype=jnp.int32)
        out = pl.pallas_call(
            kern,
            out_shape=out_shape,
            grid_spec=grid_spec,
            compiler_params=params,
            cost_estimate=cost,
        )(seed_arr, x_in, pe_in)
        return out.reshape(S, B, D) if flat_batch else out


if __name__ == "__main__":
    key = jax.random.PRNGKey(0)

    def run_case(seq_len, batch, d_model, dropout=0.1):
        mod = PositionalEncodingPallas(d_model=d_model, dropout=dropout, max_len=64)
        x = jax.random.normal(jax.random.fold_in(key, batch),
                              (seq_len, batch, d_model), dtype=jnp.float32)
        ref = x + mod.pe[:seq_len][:, None, :]

        # Eval mode: dropout is identity.
        y = mod(x, training=False)
        jax.block_until_ready(y)
        assert y.shape == x.shape and y.dtype == x.dtype
        assert jnp.allclose(y, ref, atol=1e-6), "eval-path mismatch vs reference"

        # Training mode: each element is 0 or (x+pe)/(1-p).
        y_tr = mod(x, training=True, seed=123)
        jax.block_until_ready(y_tr)
        assert y_tr.shape == x.shape and y_tr.dtype == x.dtype
        scaled = ref / (1.0 - mod.p)
        ok = jnp.isclose(y_tr, 0.0, atol=1e-6) | jnp.isclose(y_tr, scaled, atol=1e-5)
        assert bool(jnp.all(ok)), "training values not in {0, (x+pe)/(1-p)}"
        dropped = int(jnp.sum(jnp.isclose(y_tr, 0.0, atol=1e-6)
                              & (jnp.abs(scaled) > 1e-4)))
        assert 0 < dropped < y_tr.size, "dropout mask looks degenerate"

    run_case(8, 2, 32)   # small batch  -> flattened [S, B*D] lane-dense path
    run_case(8, 8, 32)   # batch % 8==0 -> 3-D blocks + in-kernel pe broadcast
    print("KERNEL_OK")
</pallas_src>

<mosaic_0001>
module attributes {stable_mosaic.version = 11 : i64} {
  func.func @_add_kernel_2d(%arg0: i32, %arg1: memref<8x64xf32, #tpu.memory_space<vmem>>, %arg2: memref<8x64xf32, #tpu.memory_space<vmem>>, %arg3: memref<8x64xf32, #tpu.memory_space<vmem>>) attributes {dimension_semantics = [#tpu.dimension_semantics<parallel>], iteration_bounds = array<i64: 1>, scalar_prefetch = 0 : i64, scratch_operands = 0 : i64, tpu.core_type = #tpu.core_type<tc>, window_params = [{transform_indices = @transform_0, window_bounds = array<i64: 8, 64>}, {transform_indices = @transform_1, window_bounds = array<i64: 8, 64>}, {transform_indices = @transform_2, window_bounds = array<i64: 8, 64>}]} {
    %c0 = arith.constant 0 : index
    %c0_0 = arith.constant 0 : index
    %0 = vector.load %arg1[%c0, %c0_0] : memref<8x64xf32, #tpu.memory_space<vmem>>, vector<8x64xf32>
    %c0_1 = arith.constant 0 : index
    %c0_2 = arith.constant 0 : index
    %1 = vector.load %arg2[%c0_1, %c0_2] : memref<8x64xf32, #tpu.memory_space<vmem>>, vector<8x64xf32>
    %2 = arith.addf %0, %1 : vector<8x64xf32>
    %c0_3 = arith.constant 0 : index
    %c0_4 = arith.constant 0 : index
    %3 = vector.load %arg3[%c0_3, %c0_4] : memref<8x64xf32, #tpu.memory_space<vmem>>, vector<8x64xf32>
    tpu.vector_store %arg3[%c0_3, %c0_4], %2 {strides = array<i32>} : memref<8x64xf32, #tpu.memory_space<vmem>>, vector<8x64xf32>,
    return
  }
  func.func @transform_0(%arg0: i32) -> (i32, i32) {
    %c0_i32 = arith.constant 0 : i32
    %c0_i32_0 = arith.constant 0 : i32
    return %arg0, %c0_i32 : i32, i32
  }
  func.func @transform_1(%arg0: i32) -> (i32, i32) {
    %c0_i32 = arith.constant 0 : i32
    %c0_i32_0 = arith.constant 0 : i32
    return %arg0, %c0_i32 : i32, i32
  }
  func.func @transform_2(%arg0: i32) -> (i32, i32) {
    %c0_i32 = arith.constant 0 : i32
    %c0_i32_0 = arith.constant 0 : i32
    return %arg0, %c0_i32 : i32, i32
  }
}

</mosaic_0001>

<bundles_post_ra>
// kernel: tpu_custom_call.1
= control target key start
LH: loop header
LB: loop body
LE: loop exit
PB: predicated region body
PF: predicated region fallthrough
CT: control target
= control target key end

     0   :  { %7 = vsyncpa [#allocation3], 0  ;;  %s171_s0 = inlined_call_operand.hbm [shape: f32[8,64], index: 0, kind: input, shape index: {}]   ;;  %s172_s1 = inlined_call_operand.hbm [shape: f32[8,64], index: 1, kind: input, shape index: {}]   ;;  %s173_s2 = inlined_call_operand.hbm [shape: f32[8,64], index: 2, kind: output, shape index: {}]  }
   0x1   :  { %8 = vsyncpa [#allocation6], 0 }
   0x2   :  { %9 = vsyncpa [#allocation4], 0  ;;  %s15_s11 = sshll.u32 %s171_s0, 4  ;;  %s144_s12 = smov [#allocation2]   ;;  %s16_s11 = int_to_ptr.hbm [resolvable:$true] %s15_s11 }
   0x3   :  { %s17_s13 = sshll.u32 %s144_s12, 4  ;;  %s26_s16 = sshll.u32 %s172_s1, 4  ;;  %s18_s13 = int_to_ptr.vmem [resolvable:$true] %s17_s13  ;;  %s27_s16 = int_to_ptr.hbm [resolvable:$true] %s26_s16 }
   0x4   :  { %20 = dma.hbm_to_vmem [thread:$0]  %s16_s11, 128, %s18_s13, [#allocation3]  }
   0x5   :  { %s145_s17 = smov [#allocation5]  }
   0x6   :  { %s28_s18 = sshll.u32 %s145_s17, 4  ;;  %s29_s18 = int_to_ptr.vmem [resolvable:$true] %s28_s18 }
   0x7   :  { %31 = dma.hbm_to_vmem [thread:$0]  %s27_s16, 128, %s29_s18, [#allocation6]  }
   0x8   :  { %138 = dma.done.wait [#allocation3], 128  }
   0x9   :  { %139 = vsyncadd [#allocation3], 4294967168 }
   0xa   :  { %140 = dma.done.wait [#allocation6], 128  }
   0xb   :  { %141 = vsyncadd [#allocation6], 4294967168  ;;  %s146_s19 = smov [#allocation7]   ;;  %s52_s22 = sshll.u32 %s173_s2, 4  ;;  %v40_v0 = vld [vmem:[#allocation2] sm:$0xff]  ;;  %v41_v1 = vld [vmem:[#allocation5] sm:$0xff]  ;;  %s53_s22 = int_to_ptr.hbm [resolvable:$true] %s52_s22 }
   0xc   :  { %s50_s0 = sshll.u32 %s146_s19, 4  ;;  %vm43_vm0 = vcmask 523264   ;;  %v42_v2 = vadd.f32 %v41_v1, %v40_v0  ;;  %s51_s0 = int_to_ptr.vmem [resolvable:$true] %s50_s0 }
   0xe   :  { %44 = vst.msk [vmem:[#allocation7] sm:$0xff] %vm43_vm0, %v42_v2 }
   0xf   :  { %55 = dma.vmem_to_hbm [thread:$0]  %s51_s0, 128, %s53_s22, [#allocation4]  }
  0x10   :  { %142 = dma.done.wait [#allocation4], 128  }
  0x11   :  { %143 = vsyncadd [#allocation4], 4294967168 }
  0x12   :  { %60 = vsyncpa [#allocation3], 1 }
  0x13   :  { %61 = vsyncpa [#allocation6], 1 }
  0x14   :  { %62 = vsyncpa [#allocation4], 1 }

</bundles_post_ra>
